<compile_context>
chip_gen: v6e
topology: v6e:2x2x1
jax: 0.10.0
libtpu: 0.0.40
codegen_flags: <defaults>
</compile_context>

<pallas_src>
import functools

import jax
import jax.numpy as jnp
import numpy as np
from jax import lax
from jax.experimental import pallas as pl
from jax.experimental.pallas import tpu as pltpu


def _cdiv(a, b):
    return -(-a // b)


# ----------------------------------------------------------------------------
# In-kernel helpers
# ----------------------------------------------------------------------------
def _pair_contribs(rows, n):
    """rows: list of n (C, r, 128) arrays.  Returns the NPAIRS per-pair (r, 128)
    partial Gram sums (reduced over C) in upper-triangular order."""
    out = []
    for i in range(n):
        for j in range(i, n):
            out.append(jnp.sum(rows[i] * rows[j], axis=0))
    return out


def _gram_accumulate(pin, ptg, out_ref):
    """Accumulate per-pair per-lane Gram partials of z1 = cat([pin, ptg], 0)
    into out_ref[0] of shape (NPAIRS, acc_rows, 128).  pin/ptg: (B,C,R,128)."""
    B, C, R, L = pin.shape
    n = 2 * B
    if R % 8 == 0 and R > 8:
        # Register-blocked: iterate 8-sublane groups; hoist the n*C row vregs
        # of each group once and form all NPAIRS products from registers,
        # carrying the per-pair (8, 128) accumulators across groups.
        G = R // 8
        pin5 = pin.reshape(B, C, G, 8, L)
        ptg5 = ptg.reshape(B, C, G, 8, L)
        acc = None
        for g in range(G):
            rows = ([pin5[b, :, g] for b in range(B)]
                    + [ptg5[b, :, g] for b in range(B)])
            contribs = _pair_contribs(rows, n)
            acc = contribs if acc is None else [a + c for a, c in zip(acc, contribs)]
        for p, a in enumerate(acc):
            out_ref[0, p] += a
    else:
        # Small / ragged tile (only reachable on single-tile grids): the output
        # block's second-to-last dim equals R, so no sublane fold is needed.
        rows = [pin[b] for b in range(B)] + [ptg[b] for b in range(B)]
        for p, a in enumerate(_pair_contribs(rows, n)):
            out_ref[0, p] += a


# ----------------------------------------------------------------------------
# Fused kernel: softplus confidence + channel softmax + symmetric Gram
# accumulation of z1 = cat([pin, ptg], 0) directly into the output block.
#   x_ref, t_ref : (B, C, tile_rows, 128) tile of the (B, C, rows, 128) inputs
#   out_ref      : (1, NPAIRS, acc_rows, 128) per-shard per-lane Gram partials
# ----------------------------------------------------------------------------
def fused_bt_kernel(x_ref, t_ref, out_ref, *, hw_valid, grid_k, k_per_shard,
                    has_overhang, mask_last):
    s = pl.program_id(0)          # shard (parallel axis; 2 TCs on v7x)
    k = pl.program_id(1)          # spatial tile within the shard (reduction)
    gidx = s * k_per_shard + k    # global spatial-tile index

    @pl.when(k == 0)
    def _():
        out_ref[...] = jnp.zeros_like(out_ref)

    def compute():
        x = x_ref[...].astype(jnp.float32)
        t = t_ref[...].astype(jnp.float32)
        C = x.shape[1]
        tile_rows = x.shape[2]
        num_classes = jnp.float32(C)   # TODO(synk): self.c undefined; using C.

        # Evidential confidence of the target logits (PyTorch softplus, thr=20).
        ev = jnp.where(t > 20.0, t, jnp.log1p(jnp.exp(jnp.minimum(t, 20.0))))
        alpha_sum = jnp.sum(ev, axis=1, keepdims=True) + num_classes  # == sum(ev+1)
        conf = jnp.exp(-(num_classes / alpha_sum))

        def softmax_c(a):
            # axis 1 (C) is a leading plane axis -> pure VALU reduction.
            m = jnp.max(a, axis=1, keepdims=True)
            e = jnp.exp(a - m)
            inv = pl.reciprocal(jnp.sum(e, axis=1, keepdims=True), approx=False)
            return e * inv

        pin = softmax_c(x)                    # softmax(x + 1) == softmax(x)
        ptg = softmax_c((t + 1.0) * conf)

        if mask_last:
            # Zero padded spatial columns; only the last global tile pays.
            def apply_mask(args):
                p_, q_ = args
                sub_i = lax.broadcasted_iota(jnp.int32, (tile_rows, 128), 0)
                lane_i = lax.broadcasted_iota(jnp.int32, (tile_rows, 128), 1)
                pos = gidx * (tile_rows * 128) + sub_i * 128 + lane_i
                valid = (pos < hw_valid).astype(jnp.float32)[None, None]
                return p_ * valid, q_ * valid

            if grid_k == 1:
                pin, ptg = apply_mask((pin, ptg))
            else:
                pin, ptg = lax.cond(gidx == grid_k - 1, apply_mask,
                                    lambda a: a, (pin, ptg))

        _gram_accumulate(pin, ptg, out_ref)

    if has_overhang:
        @pl.when(gidx < grid_k)
        def _():
            compute()
    else:
        compute()


# ----------------------------------------------------------------------------
# Tiny JAX epilogue: (NPAIRS,) Gram entries -> masked Barlow-Twins dice loss.
# ----------------------------------------------------------------------------
def _loss_from_gram_pairs(gpairs, batch, lambd, smooth=1e-6):
    n = 2 * batch
    idx = np.zeros((n, n), dtype=np.int32)
    p = 0
    for i in range(n):
        for j in range(i, n):
            idx[i, j] = p
            idx[j, i] = p
            p += 1
    gp = gpairs[idx]                          # (n, n): <z1_i, z1_j>
    swap = (np.arange(n) + batch) % n         # z2[j] = z1[swap(j)]
    g = gp[:, swap]                           # intersect: <z1_i, z2_j>
    zs = jnp.diagonal(gp)                     # ||z1_i||^2
    ys = zs[swap]                             # ||z2_j||^2
    d = (2.0 * g + smooth) / (zs[:, None] + ys[None, :] + smooth)

    ii = np.arange(n)[:, None]
    jj = np.arange(n)[None, :]
    d = d * jnp.asarray(np.abs(ii - jj) != batch, dtype=d.dtype)   # mask
    on_diag = jnp.sum((jnp.diagonal(d) - 1.0) ** 2)
    off_diag = jnp.sum(jnp.where(jnp.asarray(ii == jj), 0.0, d * d))
    return on_diag + lambd * off_diag


# ----------------------------------------------------------------------------
# Wrapper
# ----------------------------------------------------------------------------
def barlow_twins_loss(x, t, lambd=0.005):
    """x, t: (B, C, H, W) NCHW logits.  Returns the scalar Barlow-Twins loss."""
    B, C, H, W = x.shape
    HW = H * W
    n = 2 * B
    npairs = n * (n + 1) // 2

    def stream(a):
        keep = (a.dtype == jnp.float32) or (a.dtype == jnp.bfloat16)
        return a if keep else a.astype(jnp.float32)

    xs, ts = stream(x), stream(t)
    granule = 16 if (xs.dtype == jnp.bfloat16 or ts.dtype == jnp.bfloat16) else 8

    rows_valid = _cdiv(HW, 128)

    # Per-generation VMEM budget (v7x: 64 MiB/TC; v5e/v6e: 128 MiB).
    try:
        vmem_cap = int(pltpu.get_tpu_info().vmem_capacity_bytes)
    except Exception:
        vmem_cap = 64 * 1024 * 1024
    vmem_limit = int(min(vmem_cap * 3 // 4, 96 * 1024 * 1024))
    # Working set per grid step ~ 2 inputs x 2 buffers + ~8 block-sized temps.
    per_row_bytes = B * C * 128 * 4
    block_budget = max(per_row_bytes * granule, vmem_limit // 12)
    max_tile_rows = max(granule,
                        min(256, (block_budget // per_row_bytes) // granule * granule))

    if rows_valid <= max_tile_rows:
        tile_rows = rows_valid                 # single tile; no row padding
        grid_k = 1
    else:
        tile_rows = None
        cand = max_tile_rows
        while cand >= granule:                 # prefer exact divisor -> no pad
            if rows_valid % cand == 0:
                tile_rows = cand
                break
            cand -= granule
        if tile_rows is None:
            tile_rows = max_tile_rows
        grid_k = _cdiv(rows_valid, tile_rows)

    rows_total = grid_k * tile_rows
    hw_pad = rows_total * 128
    mask_last = hw_pad != HW

    num_shards = 2 if grid_k >= 2 else 1       # always split the reduction 2-way
    k_per_shard = _cdiv(grid_k, num_shards)
    has_overhang = num_shards * k_per_shard > grid_k

    acc_rows = 8 if tile_rows % 8 == 0 else tile_rows

    def prep(a):
        a3 = a.reshape(B, C, HW)
        if hw_pad != HW:
            # Only taken when HW is not a multiple of 128*tile_rows.
            a3 = jnp.pad(a3, ((0, 0), (0, 0), (0, hw_pad - HW)))
        return a3.reshape(B, C, rows_total, 128)

    x4, t4 = prep(xs), prep(ts)

    def in_index(s, k):
        gidx = s * k_per_shard + k
        if has_overhang:
            # Clamp the overhang step to the previous block index: Pallas skips
            # the re-DMA and the kernel skips the compute via pl.when.
            gidx = jnp.minimum(gidx, grid_k - 1)
        return (0, 0, gidx, 0)

    kern = functools.partial(
        fused_bt_kernel, hw_valid=HW, grid_k=grid_k, k_per_shard=k_per_shard,
        has_overhang=has_overhang, mask_last=mask_last)

    in_spec = pl.BlockSpec((B, C, tile_rows, 128), in_index)
    out_spec = pl.BlockSpec((1, npairs, acc_rows, 128), lambda s, k: (s, 0, 0, 0))

    cost = pl.CostEstimate(
        flops=int(2 * npairs * C * HW + 12 * B * C * HW),
        transcendentals=int(5 * B * C * HW),
        bytes_accessed=int(x4.size * x4.dtype.itemsize
                           + t4.size * t4.dtype.itemsize
                           + num_shards * npairs * acc_rows * 128 * 4),
    )

    partial_gram = pl.pallas_call(
        kern,
        out_shape=jax.ShapeDtypeStruct((num_shards, npairs, acc_rows, 128),
                                       jnp.float32),
        grid=(num_shards, k_per_shard),
        in_specs=[in_spec, in_spec],
        out_specs=out_spec,
        compiler_params=pltpu.CompilerParams(
            dimension_semantics=("parallel", "arbitrary"),
            vmem_limit_bytes=vmem_limit),
        cost_estimate=cost,
    )(x4, t4)

    gpairs = jnp.sum(partial_gram, axis=(0, 2, 3))        # (NPAIRS,)
    return _loss_from_gram_pairs(gpairs, B, lambd)


# ----------------------------------------------------------------------------
# Pure-JAX reference (mirrors the PyTorch forward)
# ----------------------------------------------------------------------------
def barlow_twins_loss_ref(x, t, lambd=0.005):
    B, C, H, W = x.shape
    x = x.astype(jnp.float32)
    t = t.astype(jnp.float32)
    ev = jnp.where(t > 20.0, t, jnp.log1p(jnp.exp(jnp.minimum(t, 20.0))))
    S = jnp.sum(ev + 1.0, axis=1, keepdims=True)
    conf = jnp.exp(-(jnp.float32(C) / S))
    pin = jax.nn.softmax(x + 1.0, axis=1)
    ptg = jax.nn.softmax((t + 1.0) * conf, axis=1)
    z1 = jnp.concatenate([pin, ptg], axis=0)
    z2 = jnp.concatenate([ptg, pin], axis=0)
    smooth = 1e-6
    inter = jnp.einsum('ichw,jchw->ij', z1, z2)
    zs = jnp.sum(z1 * z1, axis=(1, 2, 3))[:, None]
    ys = jnp.sum(z2 * z2, axis=(1, 2, 3))[None, :]
    D = (2.0 * inter + smooth) / (zs + ys + smooth)
    N = 2 * B
    ii = jnp.arange(N)[:, None]
    jj = jnp.arange(N)[None, :]
    D = jnp.where(jnp.abs(ii - jj) == B, 0.0, D)
    on = jnp.sum((jnp.diagonal(D) - 1.0) ** 2)
    off = jnp.sum(jnp.where(ii == jj, 0.0, D ** 2))
    return on + lambd * off


if __name__ == "__main__":
    key = jax.random.PRNGKey(0)
    kx, kt = jax.random.split(key)
    B, C, H, W = 2, 4, 16, 16
    x = jax.random.normal(kx, (B, C, H, W), dtype=jnp.float32)
    t = jax.random.normal(kt, (B, C, H, W), dtype=jnp.float32)

    loss_fn = jax.jit(barlow_twins_loss)
    loss = jax.block_until_ready(loss_fn(x, t))
    loss_ref = jax.block_until_ready(barlow_twins_loss_ref(x, t, lambd=0.005))

    assert np.isfinite(float(loss))
    np.testing.assert_allclose(float(loss), float(loss_ref), rtol=1e-4, atol=1e-5)
    print("KERNEL_OK")
</pallas_src>

<mosaic_0001>
module attributes {stable_mosaic.version = 11 : i64} {
  func.func @fused_bt_kernel(%arg0: i32, %arg1: i32, %arg2: memref<2x4x2x128xf32, #tpu.memory_space<vmem>>, %arg3: memref<2x4x2x128xf32, #tpu.memory_space<vmem>>, %arg4: memref<1x10x2x128xf32, #tpu.memory_space<vmem>>) attributes {dimension_semantics = [#tpu.dimension_semantics<parallel>, #tpu.dimension_semantics<arbitrary>], iteration_bounds = array<i64: 1, 1>, scalar_prefetch = 0 : i64, scratch_operands = 0 : i64, tpu.core_type = #tpu.core_type<tc>, window_params = [{transform_indices = @transform_0, window_bounds = array<i64: 2, 4, 2, 128>}, {transform_indices = @transform_1, window_bounds = array<i64: 2, 4, 2, 128>}, {transform_indices = @transform_2, window_bounds = array<i64: 1, 10, 2, 128>}]} {
    %c0_i32 = arith.constant 0 : i32
    %0 = arith.cmpi eq, %arg1, %c0_i32 : i32
    %1 = arith.extui %0 : i1 to i32
    %c0_i32_0 = arith.constant 0 : i32
    %2 = arith.cmpi ne, %1, %c0_i32_0 : i32
    scf.if %2 {
      %cst_99 = arith.constant 0.000000e+00 : f32
      %133 = vector.broadcast %cst_99 : f32 to vector<1x10x2x128xf32>
      %c0_100 = arith.constant 0 : index
      %c0_101 = arith.constant 0 : index
      %c0_102 = arith.constant 0 : index
      %c0_103 = arith.constant 0 : index
      %134 = vector.load %arg4[%c0_100, %c0_101, %c0_102, %c0_103] : memref<1x10x2x128xf32, #tpu.memory_space<vmem>>, vector<1x10x2x128xf32>
      tpu.vector_store %arg4[%c0_100, %c0_101, %c0_102, %c0_103], %133 {strides = array<i32>} : memref<1x10x2x128xf32, #tpu.memory_space<vmem>>, vector<1x10x2x128xf32>,
    } else {
    }
    %c0 = arith.constant 0 : index
    %c0_1 = arith.constant 0 : index
    %c0_2 = arith.constant 0 : index
    %c0_3 = arith.constant 0 : index
    %3 = vector.load %arg2[%c0, %c0_1, %c0_2, %c0_3] : memref<2x4x2x128xf32, #tpu.memory_space<vmem>>, vector<2x4x2x128xf32>
    %c0_4 = arith.constant 0 : index
    %c0_5 = arith.constant 0 : index
    %c0_6 = arith.constant 0 : index
    %c0_7 = arith.constant 0 : index
    %4 = vector.load %arg3[%c0_4, %c0_5, %c0_6, %c0_7] : memref<2x4x2x128xf32, #tpu.memory_space<vmem>>, vector<2x4x2x128xf32>
    %cst = arith.constant 2.000000e+01 : f32
    %5 = vector.broadcast %cst : f32 to vector<2x4x2x128xf32>
    %6 = arith.cmpf ogt, %4, %5 : vector<2x4x2x128xf32>
    %cst_8 = arith.constant 2.000000e+01 : f32
    %7 = vector.broadcast %cst_8 : f32 to vector<2x4x2x128xf32>
    %8 = arith.minimumf %4, %7 : vector<2x4x2x128xf32>
    %9 = math.exp %8 : vector<2x4x2x128xf32>
    %10 = math.log1p %9 : vector<2x4x2x128xf32>
    %11 = arith.select %6, %4, %10 : vector<2x4x2x128xi1>, vector<2x4x2x128xf32>
    %cst_9 = arith.constant dense<0.000000e+00> : vector<2x2x128xf32>
    %12 = vector.multi_reduction <add>, %11, %cst_9 [1] : vector<2x4x2x128xf32> to vector<2x2x128xf32>
    %13 = vector.shape_cast %12 : vector<2x2x128xf32> to vector<2x1x2x128xf32>
    %cst_10 = arith.constant 4.000000e+00 : f32
    %14 = vector.broadcast %cst_10 : f32 to vector<2x1x2x128xf32>
    %15 = arith.addf %13, %14 : vector<2x1x2x128xf32>
    %cst_11 = arith.constant 4.000000e+00 : f32
    %16 = vector.broadcast %cst_11 : f32 to vector<2x1x2x128xf32>
    %17 = arith.divf %16, %15 : vector<2x1x2x128xf32>
    %cst_12 = arith.constant 0.000000e+00 : f32
    %18 = vector.broadcast %cst_12 : f32 to vector<2x1x2x128xf32>
    %19 = arith.subf %18, %17 : vector<2x1x2x128xf32>
    %20 = math.exp %19 : vector<2x1x2x128xf32>
    %cst_13 = arith.constant dense<0xFF800000> : vector<2x2x128xf32>
    %21 = vector.multi_reduction <maximumf>, %3, %cst_13 [1] : vector<2x4x2x128xf32> to vector<2x2x128xf32>
    %22 = vector.shape_cast %21 : vector<2x2x128xf32> to vector<2x1x2x128xf32>
    %23 = vector.broadcast %22 : vector<2x1x2x128xf32> to vector<2x4x2x128xf32>
    %24 = arith.subf %3, %23 : vector<2x4x2x128xf32>
    %25 = math.exp %24 : vector<2x4x2x128xf32>
    %cst_14 = arith.constant dense<0.000000e+00> : vector<2x2x128xf32>
    %26 = vector.multi_reduction <add>, %25, %cst_14 [1] : vector<2x4x2x128xf32> to vector<2x2x128xf32>
    %27 = vector.shape_cast %26 : vector<2x2x128xf32> to vector<2x1x2x128xf32>
    %28 = tpu.reciprocal %27 : vector<2x1x2x128xf32> -> vector<2x1x2x128xf32>
    %29 = vector.broadcast %28 : vector<2x1x2x128xf32> to vector<2x4x2x128xf32>
    %30 = arith.mulf %25, %29 : vector<2x4x2x128xf32>
    %cst_15 = arith.constant 1.000000e+00 : f32
    %31 = vector.broadcast %cst_15 : f32 to vector<2x4x2x128xf32>
    %32 = arith.addf %4, %31 : vector<2x4x2x128xf32>
    %33 = vector.broadcast %20 : vector<2x1x2x128xf32> to vector<2x4x2x128xf32>
    %34 = arith.mulf %32, %33 : vector<2x4x2x128xf32>
    %cst_16 = arith.constant dense<0xFF800000> : vector<2x2x128xf32>
    %35 = vector.multi_reduction <maximumf>, %34, %cst_16 [1] : vector<2x4x2x128xf32> to vector<2x2x128xf32>
    %36 = vector.shape_cast %35 : vector<2x2x128xf32> to vector<2x1x2x128xf32>
    %37 = vector.broadcast %36 : vector<2x1x2x128xf32> to vector<2x4x2x128xf32>
    %38 = arith.subf %34, %37 : vector<2x4x2x128xf32>
    %39 = math.exp %38 : vector<2x4x2x128xf32>
    %cst_17 = arith.constant dense<0.000000e+00> : vector<2x2x128xf32>
    %40 = vector.multi_reduction <add>, %39, %cst_17 [1] : vector<2x4x2x128xf32> to vector<2x2x128xf32>
    %41 = vector.shape_cast %40 : vector<2x2x128xf32> to vector<2x1x2x128xf32>
    %42 = tpu.reciprocal %41 : vector<2x1x2x128xf32> -> vector<2x1x2x128xf32>
    %43 = vector.broadcast %42 : vector<2x1x2x128xf32> to vector<2x4x2x128xf32>
    %44 = arith.mulf %39, %43 : vector<2x4x2x128xf32>
    %45 = vector.extract_strided_slice %30 {offsets = [0, 0, 0, 0], sizes = [1, 4, 2, 128], strides = [1, 1, 1, 1]} : vector<2x4x2x128xf32> to vector<1x4x2x128xf32>
    %46 = vector.shape_cast %45 : vector<1x4x2x128xf32> to vector<4x2x128xf32>
    %47 = vector.extract_strided_slice %30 {offsets = [1, 0, 0, 0], sizes = [1, 4, 2, 128], strides = [1, 1, 1, 1]} : vector<2x4x2x128xf32> to vector<1x4x2x128xf32>
    %48 = vector.shape_cast %47 : vector<1x4x2x128xf32> to vector<4x2x128xf32>
    %49 = vector.extract_strided_slice %44 {offsets = [0, 0, 0, 0], sizes = [1, 4, 2, 128], strides = [1, 1, 1, 1]} : vector<2x4x2x128xf32> to vector<1x4x2x128xf32>
    %50 = vector.shape_cast %49 : vector<1x4x2x128xf32> to vector<4x2x128xf32>
    %51 = vector.extract_strided_slice %44 {offsets = [1, 0, 0, 0], sizes = [1, 4, 2, 128], strides = [1, 1, 1, 1]} : vector<2x4x2x128xf32> to vector<1x4x2x128xf32>
    %52 = vector.shape_cast %51 : vector<1x4x2x128xf32> to vector<4x2x128xf32>
    %53 = arith.mulf %46, %46 : vector<4x2x128xf32>
    %cst_18 = arith.constant dense<0.000000e+00> : vector<2x128xf32>
    %54 = vector.multi_reduction <add>, %53, %cst_18 [0] : vector<4x2x128xf32> to vector<2x128xf32>
    %55 = arith.mulf %46, %48 : vector<4x2x128xf32>
    %cst_19 = arith.constant dense<0.000000e+00> : vector<2x128xf32>
    %56 = vector.multi_reduction <add>, %55, %cst_19 [0] : vector<4x2x128xf32> to vector<2x128xf32>
    %57 = arith.mulf %46, %50 : vector<4x2x128xf32>
    %cst_20 = arith.constant dense<0.000000e+00> : vector<2x128xf32>
    %58 = vector.multi_reduction <add>, %57, %cst_20 [0] : vector<4x2x128xf32> to vector<2x128xf32>
    %59 = arith.mulf %46, %52 : vector<4x2x128xf32>
    %cst_21 = arith.constant dense<0.000000e+00> : vector<2x128xf32>
    %60 = vector.multi_reduction <add>, %59, %cst_21 [0] : vector<4x2x128xf32> to vector<2x128xf32>
    %61 = arith.mulf %48, %48 : vector<4x2x128xf32>
    %cst_22 = arith.constant dense<0.000000e+00> : vector<2x128xf32>
    %62 = vector.multi_reduction <add>, %61, %cst_22 [0] : vector<4x2x128xf32> to vector<2x128xf32>
    %63 = arith.mulf %48, %50 : vector<4x2x128xf32>
    %cst_23 = arith.constant dense<0.000000e+00> : vector<2x128xf32>
    %64 = vector.multi_reduction <add>, %63, %cst_23 [0] : vector<4x2x128xf32> to vector<2x128xf32>
    %65 = arith.mulf %48, %52 : vector<4x2x128xf32>
    %cst_24 = arith.constant dense<0.000000e+00> : vector<2x128xf32>
    %66 = vector.multi_reduction <add>, %65, %cst_24 [0] : vector<4x2x128xf32> to vector<2x128xf32>
    %67 = arith.mulf %50, %50 : vector<4x2x128xf32>
    %cst_25 = arith.constant dense<0.000000e+00> : vector<2x128xf32>
    %68 = vector.multi_reduction <add>, %67, %cst_25 [0] : vector<4x2x128xf32> to vector<2x128xf32>
    %69 = arith.mulf %50, %52 : vector<4x2x128xf32>
    %cst_26 = arith.constant dense<0.000000e+00> : vector<2x128xf32>
    %70 = vector.multi_reduction <add>, %69, %cst_26 [0] : vector<4x2x128xf32> to vector<2x128xf32>
    %71 = arith.mulf %52, %52 : vector<4x2x128xf32>
    %cst_27 = arith.constant dense<0.000000e+00> : vector<2x128xf32>
    %72 = vector.multi_reduction <add>, %71, %cst_27 [0] : vector<4x2x128xf32> to vector<2x128xf32>
    %c0_28 = arith.constant 0 : index
    %c0_29 = arith.constant 0 : index
    %c0_30 = arith.constant 0 : index
    %c0_31 = arith.constant 0 : index
    %73 = vector.load %arg4[%c0_28, %c0_29, %c0_30, %c0_31] : memref<1x10x2x128xf32, #tpu.memory_space<vmem>>, vector<1x1x2x128xf32>
    %74 = vector.shape_cast %73 : vector<1x1x2x128xf32> to vector<2x128xf32>
    %75 = arith.addf %74, %54 : vector<2x128xf32>
    %c0_32 = arith.constant 0 : index
    %c0_33 = arith.constant 0 : index
    %c0_34 = arith.constant 0 : index
    %c0_35 = arith.constant 0 : index
    %76 = vector.load %arg4[%c0_32, %c0_33, %c0_34, %c0_35] : memref<1x10x2x128xf32, #tpu.memory_space<vmem>>, vector<1x1x2x128xf32>
    %77 = vector.shape_cast %76 : vector<1x1x2x128xf32> to vector<2x128xf32>
    %78 = vector.shape_cast %75 : vector<2x128xf32> to vector<1x1x2x128xf32>
    tpu.vector_store %arg4[%c0_32, %c0_33, %c0_34, %c0_35], %78 {strides = array<i32>} : memref<1x10x2x128xf32, #tpu.memory_space<vmem>>, vector<1x1x2x128xf32>,
    %c0_36 = arith.constant 0 : index
    %c1 = arith.constant 1 : index
    %c0_37 = arith.constant 0 : index
    %c0_38 = arith.constant 0 : index
    %79 = vector.load %arg4[%c0_36, %c1, %c0_37, %c0_38] : memref<1x10x2x128xf32, #tpu.memory_space<vmem>>, vector<1x1x2x128xf32>
    %80 = vector.shape_cast %79 : vector<1x1x2x128xf32> to vector<2x128xf32>
    %81 = arith.addf %80, %56 : vector<2x128xf32>
    %c0_39 = arith.constant 0 : index
    %c1_40 = arith.constant 1 : index
    %c0_41 = arith.constant 0 : index
    %c0_42 = arith.constant 0 : index
    %82 = vector.load %arg4[%c0_39, %c1_40, %c0_41, %c0_42] : memref<1x10x2x128xf32, #tpu.memory_space<vmem>>, vector<1x1x2x128xf32>
    %83 = vector.shape_cast %82 : vector<1x1x2x128xf32> to vector<2x128xf32>
    %84 = vector.shape_cast %81 : vector<2x128xf32> to vector<1x1x2x128xf32>
    tpu.vector_store %arg4[%c0_39, %c1_40, %c0_41, %c0_42], %84 {strides = array<i32>} : memref<1x10x2x128xf32, #tpu.memory_space<vmem>>, vector<1x1x2x128xf32>,
    %c0_43 = arith.constant 0 : index
    %c2 = arith.constant 2 : index
    %c0_44 = arith.constant 0 : index
    %c0_45 = arith.constant 0 : index
    %85 = vector.load %arg4[%c0_43, %c2, %c0_44, %c0_45] : memref<1x10x2x128xf32, #tpu.memory_space<vmem>>, vector<1x1x2x128xf32>
    %86 = vector.shape_cast %85 : vector<1x1x2x128xf32> to vector<2x128xf32>
    %87 = arith.addf %86, %58 : vector<2x128xf32>
    %c0_46 = arith.constant 0 : index
    %c2_47 = arith.constant 2 : index
    %c0_48 = arith.constant 0 : index
    %c0_49 = arith.constant 0 : index
    %88 = vector.load %arg4[%c0_46, %c2_47, %c0_48, %c0_49] : memref<1x10x2x128xf32, #tpu.memory_space<vmem>>, vector<1x1x2x128xf32>
    %89 = vector.shape_cast %88 : vector<1x1x2x128xf32> to vector<2x128xf32>
    %90 = vector.shape_cast %87 : vector<2x128xf32> to vector<1x1x2x128xf32>
    tpu.vector_store %arg4[%c0_46, %c2_47, %c0_48, %c0_49], %90 {strides = array<i32>} : memref<1x10x2x128xf32, #tpu.memory_space<vmem>>, vector<1x1x2x128xf32>,
    %c0_50 = arith.constant 0 : index
    %c3 = arith.constant 3 : index
    %c0_51 = arith.constant 0 : index
    %c0_52 = arith.constant 0 : index
    %91 = vector.load %arg4[%c0_50, %c3, %c0_51, %c0_52] : memref<1x10x2x128xf32, #tpu.memory_space<vmem>>, vector<1x1x2x128xf32>
    %92 = vector.shape_cast %91 : vector<1x1x2x128xf32> to vector<2x128xf32>
    %93 = arith.addf %92, %60 : vector<2x128xf32>
    %c0_53 = arith.constant 0 : index
    %c3_54 = arith.constant 3 : index
    %c0_55 = arith.constant 0 : index
    %c0_56 = arith.constant 0 : index
    %94 = vector.load %arg4[%c0_53, %c3_54, %c0_55, %c0_56] : memref<1x10x2x128xf32, #tpu.memory_space<vmem>>, vector<1x1x2x128xf32>
    %95 = vector.shape_cast %94 : vector<1x1x2x128xf32> to vector<2x128xf32>
    %96 = vector.shape_cast %93 : vector<2x128xf32> to vector<1x1x2x128xf32>
    tpu.vector_store %arg4[%c0_53, %c3_54, %c0_55, %c0_56], %96 {strides = array<i32>} : memref<1x10x2x128xf32, #tpu.memory_space<vmem>>, vector<1x1x2x128xf32>,
    %c0_57 = arith.constant 0 : index
    %c4 = arith.constant 4 : index
    %c0_58 = arith.constant 0 : index
    %c0_59 = arith.constant 0 : index
    %97 = vector.load %arg4[%c0_57, %c4, %c0_58, %c0_59] : memref<1x10x2x128xf32, #tpu.memory_space<vmem>>, vector<1x1x2x128xf32>
    %98 = vector.shape_cast %97 : vector<1x1x2x128xf32> to vector<2x128xf32>
    %99 = arith.addf %98, %62 : vector<2x128xf32>
    %c0_60 = arith.constant 0 : index
    %c4_61 = arith.constant 4 : index
    %c0_62 = arith.constant 0 : index
    %c0_63 = arith.constant 0 : index
    %100 = vector.load %arg4[%c0_60, %c4_61, %c0_62, %c0_63] : memref<1x10x2x128xf32, #tpu.memory_space<vmem>>, vector<1x1x2x128xf32>
    %101 = vector.shape_cast %100 : vector<1x1x2x128xf32> to vector<2x128xf32>
    %102 = vector.shape_cast %99 : vector<2x128xf32> to vector<1x1x2x128xf32>
    tpu.vector_store %arg4[%c0_60, %c4_61, %c0_62, %c0_63], %102 {strides = array<i32>} : memref<1x10x2x128xf32, #tpu.memory_space<vmem>>, vector<1x1x2x128xf32>,
    %c0_64 = arith.constant 0 : index
    %c5 = arith.constant 5 : index
    %c0_65 = arith.constant 0 : index
    %c0_66 = arith.constant 0 : index
    %103 = vector.load %arg4[%c0_64, %c5, %c0_65, %c0_66] : memref<1x10x2x128xf32, #tpu.memory_space<vmem>>, vector<1x1x2x128xf32>
    %104 = vector.shape_cast %103 : vector<1x1x2x128xf32> to vector<2x128xf32>
    %105 = arith.addf %104, %64 : vector<2x128xf32>
    %c0_67 = arith.constant 0 : index
    %c5_68 = arith.constant 5 : index
    %c0_69 = arith.constant 0 : index
    %c0_70 = arith.constant 0 : index
    %106 = vector.load %arg4[%c0_67, %c5_68, %c0_69, %c0_70] : memref<1x10x2x128xf32, #tpu.memory_space<vmem>>, vector<1x1x2x128xf32>
    %107 = vector.shape_cast %106 : vector<1x1x2x128xf32> to vector<2x128xf32>
    %108 = vector.shape_cast %105 : vector<2x128xf32> to vector<1x1x2x128xf32>
    tpu.vector_store %arg4[%c0_67, %c5_68, %c0_69, %c0_70], %108 {strides = array<i32>} : memref<1x10x2x128xf32, #tpu.memory_space<vmem>>, vector<1x1x2x128xf32>,
    %c0_71 = arith.constant 0 : index
    %c6 = arith.constant 6 : index
    %c0_72 = arith.constant 0 : index
    %c0_73 = arith.constant 0 : index
    %109 = vector.load %arg4[%c0_71, %c6, %c0_72, %c0_73] : memref<1x10x2x128xf32, #tpu.memory_space<vmem>>, vector<1x1x2x128xf32>
    %110 = vector.shape_cast %109 : vector<1x1x2x128xf32> to vector<2x128xf32>
    %111 = arith.addf %110, %66 : vector<2x128xf32>
    %c0_74 = arith.constant 0 : index
    %c6_75 = arith.constant 6 : index
    %c0_76 = arith.constant 0 : index
    %c0_77 = arith.constant 0 : index
    %112 = vector.load %arg4[%c0_74, %c6_75, %c0_76, %c0_77] : memref<1x10x2x128xf32, #tpu.memory_space<vmem>>, vector<1x1x2x128xf32>
    %113 = vector.shape_cast %112 : vector<1x1x2x128xf32> to vector<2x128xf32>
    %114 = vector.shape_cast %111 : vector<2x128xf32> to vector<1x1x2x128xf32>
    tpu.vector_store %arg4[%c0_74, %c6_75, %c0_76, %c0_77], %114 {strides = array<i32>} : memref<1x10x2x128xf32, #tpu.memory_space<vmem>>, vector<1x1x2x128xf32>,
    %c0_78 = arith.constant 0 : index
    %c7 = arith.constant 7 : index
    %c0_79 = arith.constant 0 : index
    %c0_80 = arith.constant 0 : index
    %115 = vector.load %arg4[%c0_78, %c7, %c0_79, %c0_80] : memref<1x10x2x128xf32, #tpu.memory_space<vmem>>, vector<1x1x2x128xf32>
    %116 = vector.shape_cast %115 : vector<1x1x2x128xf32> to vector<2x128xf32>
    %117 = arith.addf %116, %68 : vector<2x128xf32>
    %c0_81 = arith.constant 0 : index
    %c7_82 = arith.constant 7 : index
    %c0_83 = arith.constant 0 : index
    %c0_84 = arith.constant 0 : index
    %118 = vector.load %arg4[%c0_81, %c7_82, %c0_83, %c0_84] : memref<1x10x2x128xf32, #tpu.memory_space<vmem>>, vector<1x1x2x128xf32>
    %119 = vector.shape_cast %118 : vector<1x1x2x128xf32> to vector<2x128xf32>
    %120 = vector.shape_cast %117 : vector<2x128xf32> to vector<1x1x2x128xf32>
    tpu.vector_store %arg4[%c0_81, %c7_82, %c0_83, %c0_84], %120 {strides = array<i32>} : memref<1x10x2x128xf32, #tpu.memory_space<vmem>>, vector<1x1x2x128xf32>,
    %c0_85 = arith.constant 0 : index
    %c8 = arith.constant 8 : index
    %c0_86 = arith.constant 0 : index
    %c0_87 = arith.constant 0 : index
    %121 = vector.load %arg4[%c0_85, %c8, %c0_86, %c0_87] : memref<1x10x2x128xf32, #tpu.memory_space<vmem>>, vector<1x1x2x128xf32>
    %122 = vector.shape_cast %121 : vector<1x1x2x128xf32> to vector<2x128xf32>
    %123 = arith.addf %122, %70 : vector<2x128xf32>
    %c0_88 = arith.constant 0 : index
    %c8_89 = arith.constant 8 : index
    %c0_90 = arith.constant 0 : index
    %c0_91 = arith.constant 0 : index
    %124 = vector.load %arg4[%c0_88, %c8_89, %c0_90, %c0_91] : memref<1x10x2x128xf32, #tpu.memory_space<vmem>>, vector<1x1x2x128xf32>
    %125 = vector.shape_cast %124 : vector<1x1x2x128xf32> to vector<2x128xf32>
    %126 = vector.shape_cast %123 : vector<2x128xf32> to vector<1x1x2x128xf32>
    tpu.vector_store %arg4[%c0_88, %c8_89, %c0_90, %c0_91], %126 {strides = array<i32>} : memref<1x10x2x128xf32, #tpu.memory_space<vmem>>, vector<1x1x2x128xf32>,
    %c0_92 = arith.constant 0 : index
    %c9 = arith.constant 9 : index
    %c0_93 = arith.constant 0 : index
    %c0_94 = arith.constant 0 : index
    %127 = vector.load %arg4[%c0_92, %c9, %c0_93, %c0_94] : memref<1x10x2x128xf32, #tpu.memory_space<vmem>>, vector<1x1x2x128xf32>
    %128 = vector.shape_cast %127 : vector<1x1x2x128xf32> to vector<2x128xf32>
    %129 = arith.addf %128, %72 : vector<2x128xf32>
    %c0_95 = arith.constant 0 : index
    %c9_96 = arith.constant 9 : index
    %c0_97 = arith.constant 0 : index
    %c0_98 = arith.constant 0 : index
    %130 = vector.load %arg4[%c0_95, %c9_96, %c0_97, %c0_98] : memref<1x10x2x128xf32, #tpu.memory_space<vmem>>, vector<1x1x2x128xf32>
    %131 = vector.shape_cast %130 : vector<1x1x2x128xf32> to vector<2x128xf32>
    %132 = vector.shape_cast %129 : vector<2x128xf32> to vector<1x1x2x128xf32>
    tpu.vector_store %arg4[%c0_95, %c9_96, %c0_97, %c0_98], %132 {strides = array<i32>} : memref<1x10x2x128xf32, #tpu.memory_space<vmem>>, vector<1x1x2x128xf32>,
    return
  }
  func.func @transform_0(%arg0: i32, %arg1: i32) -> (i32, i32, i32, i32) {
    %c1_i32 = arith.constant 1 : i32
    %0 = arith.muli %arg0, %c1_i32 : i32
    %1 = arith.addi %0, %arg1 : i32
    %c0_i32 = arith.constant 0 : i32
    %c0_i32_0 = arith.constant 0 : i32
    %c0_i32_1 = arith.constant 0 : i32
    %c0_i32_2 = arith.constant 0 : i32
    return %c0_i32, %c0_i32_0, %1, %c0_i32_1 : i32, i32, i32, i32
  }
  func.func @transform_1(%arg0: i32, %arg1: i32) -> (i32, i32, i32, i32) {
    %c1_i32 = arith.constant 1 : i32
    %0 = arith.muli %arg0, %c1_i32 : i32
    %1 = arith.addi %0, %arg1 : i32
    %c0_i32 = arith.constant 0 : i32
    %c0_i32_0 = arith.constant 0 : i32
    %c0_i32_1 = arith.constant 0 : i32
    %c0_i32_2 = arith.constant 0 : i32
    return %c0_i32, %c0_i32_0, %1, %c0_i32_1 : i32, i32, i32, i32
  }
  func.func @transform_2(%arg0: i32, %arg1: i32) -> (i32, i32, i32, i32) {
    %c0_i32 = arith.constant 0 : i32
    %c0_i32_0 = arith.constant 0 : i32
    %c0_i32_1 = arith.constant 0 : i32
    %c0_i32_2 = arith.constant 0 : i32
    return %arg0, %c0_i32, %c0_i32_0, %c0_i32_1 : i32, i32, i32, i32
  }
}

</mosaic_0001>

<bundles_post_ra>
// kernel: barlow_twins_loss.1
= control target key start
LH: loop header
LB: loop body
LE: loop exit
PB: predicated region body
PF: predicated region fallthrough
CT: control target
= control target key end

     0   :  { %vm187_vm0 = vcmask 1041408   ;;  %v618_v0 = vmov 0.0   ;;  %s1128_s2 = inlined_call_operand.vmem [shape: f32[1,10,2,128], index: 2, kind: output, shape index: {}]   ;;  %s1129_s0 = inlined_call_operand.vmem [shape: f32[2,4,2,128], index: 0, kind: input, shape index: {}]   ;;  %s1130_s1 = inlined_call_operand.vmem [shape: f32[2,4,2,128], index: 1, kind: input, shape index: {}]  }
   0x1   :  { %49 = vst [vmem:[%s1128_s2] sm:$0x3] %v618_v0  ;;  %50 = vst [vmem:[%s1128_s2 + $0x2] sm:$0x3] %v618_v0  ;;  %v59_v1 = vld [vmem:[%s1129_s0] sm:$0x3] }
   0x2   :  { %51 = vst [vmem:[%s1128_s2 + $0x4] sm:$0x3] %v618_v0  ;;  %52 = vst [vmem:[%s1128_s2 + $0x6] sm:$0x3] %v618_v0  ;;  %v60_v2 = vld [vmem:[%s1129_s0 + $0x2] sm:$0x3] }
   0x3   :  { %53 = vst [vmem:[%s1128_s2 + $0x8] sm:$0x3] %v618_v0  ;;  %54 = vst [vmem:[%s1128_s2 + $0xa] sm:$0x3] %v618_v0  ;;  %v61_v3 = vld [vmem:[%s1129_s0 + $0x4] sm:$0x3] }
   0x4   :  { %55 = vst [vmem:[%s1128_s2 + $0xc] sm:$0x3] %v618_v0  ;;  %56 = vst [vmem:[%s1128_s2 + $0xe] sm:$0x3] %v618_v0  ;;  %v62_v4 = vld [vmem:[%s1129_s0 + $0x6] sm:$0x3] }
   0x5   :  { %57 = vst [vmem:[%s1128_s2 + $0x10] sm:$0x3] %v618_v0  ;;  %58 = vst [vmem:[%s1128_s2 + $0x12] sm:$0x3] %v618_v0  ;;  %v214_v5 = vsel %vm187_vm0, %v59_v1, -inf  ;;  %v215_v6 = vsel %vm187_vm0, %v60_v2, -inf }
   0x6   :  { %v216_v7 = vsel %vm187_vm0, %v61_v3, -inf  ;;  %v218_v9 = vsel %vm187_vm0, %v62_v4, -inf  ;;  %v63_v10 = vld [vmem:[%s1129_s0 + $0x8] sm:$0x3]  ;;  %v64_v11 = vld [vmem:[%s1129_s0 + $0xa] sm:$0x3] }
   0x7   :  { %v217_v8 = vmax.f32 %v214_v5, %v216_v7  ;;  %v219_v12 = vmax.f32 %v215_v6, %v218_v9  ;;  %v65_v13 = vld [vmem:[%s1129_s0 + $0xc] sm:$0x3]  ;;  %v66_v14 = vld [vmem:[%s1129_s0 + $0xe] sm:$0x3]  ;;  %v221_v15 = vsel %vm187_vm0, %v63_v10, -inf  ;;  %v222_v16 = vsel %vm187_vm0, %v64_v11, -inf }
   0x8   :  { %v223_v17 = vsel %vm187_vm0, %v65_v13, -inf  ;;  %v225_v18 = vsel %vm187_vm0, %v66_v14, -inf  ;;  %v699_v27 = vld [vmem:[%s1130_s1] sm:$0x3]  ;;  %v704_v28 = vld [vmem:[%s1130_s1 + $0x2] sm:$0x3] }
   0x9   :  { %v220_v19 = vmax.f32 %v217_v8, %v219_v12  ;;  %v224_v20 = vmax.f32 %v221_v15, %v223_v17  ;;  %v226_v21 = vmax.f32 %v222_v16, %v225_v18  ;;  %v709_v36 = vld [vmem:[%s1130_s1 + $0x4] sm:$0x3]  ;;  %v714_v38 = vld [vmem:[%s1130_s1 + $0x6] sm:$0x3]  ;;  %v83_v39 = vmin.f32 %v699_v27, 20.0 }
   0xa   :  { %v84_v42 = vmin.f32 %v704_v28, 20.0  ;;  %v85_v44 = vmin.f32 %v709_v36, 20.0  ;;  %v722_v45 = vld [vmem:[%s1130_s1 + $0x8] sm:$0x3]  ;;  %v86_v47 = vmin.f32 %v714_v38, 20.0  ;;  %vm75_vm3 = vcmp.gt.f32.partialorder %v699_v27, 20.0 }
   0xb   :  { %v228_v22 = vsub.f32 %v59_v1, %v220_v19  ;;  %v229_v23 = vsub.f32 %v60_v2, %v220_v19  ;;  %v230_v24 = vsub.f32 %v61_v3, %v220_v19  ;;  %v231_v25 = vsub.f32 %v62_v4, %v220_v19  ;;  %v728_v48 = vld [vmem:[%s1130_s1 + $0xa] sm:$0x3]  ;;  %v733_v51 = vld [vmem:[%s1130_s1 + $0xc] sm:$0x3]  ;;  %v739_v54 = vld [vmem:[%s1130_s1 + $0xe] sm:$0x3] }
   0xc   :  { %v227_v26 = vmax.f32 %v224_v20, %v226_v21  ;;  %v91_v49 = vmul.f32 1.442695, %v83_v39  ;;  %v93_v50 = vmul.f32 1.442695, %v84_v42  ;;  %v87_v52 = vmin.f32 %v722_v45, 20.0 }
   0xd   :  { %v236_v29 = vmul.f32 1.442695, %v228_v22  ;;  %v238_v30 = vmul.f32 1.442695, %v229_v23  ;;  %v240_v31 = vmul.f32 1.442695, %v230_v24 }
   0xe   :  { %v242_v32 = vmul.f32 1.442695, %v231_v25  ;;  %v232_v33 = vsub.f32 %v63_v10, %v227_v26  ;;  %v233_v34 = vsub.f32 %v64_v11, %v227_v26  ;;  %v234_v35 = vsub.f32 %v65_v13, %v227_v26 }
   0xf   :  { %538 = vpow2.f32 %v236_v29  ;;  %v235_v37 = vsub.f32 %v66_v14, %v227_v26  ;;  %v95_v53 = vmul.f32 1.442695, %v85_v44  ;;  %v88_v55 = vmin.f32 %v728_v48, 20.0 }
  0x10   :  { %540 = vpow2.f32 %v238_v30  ;;  %v244_v40 = vmul.f32 1.442695, %v232_v33  ;;  %v246_v41 = vmul.f32 1.442695, %v233_v34  ;;  %v248_v43 = vmul.f32 1.442695, %v234_v35 }
  0x11   :  { %542 = vpow2.f32 %v240_v31  ;;  %v250_v46 = vmul.f32 1.442695, %v235_v37  ;;  %v97_v56 = vmul.f32 1.442695, %v86_v47  ;;  %v89_v57 = vmin.f32 %v733_v51, 20.0 }
  0x12   :  { %544 = vpow2.f32 %v242_v32  ;;  %v99_v58 = vmul.f32 1.442695, %v87_v52  ;;  %v90_v59 = vmin.f32 %v739_v54, 20.0  ;;  %v101_v60 = vmul.f32 1.442695, %v88_v55 }
  0x13   :  { %546 = vpow2.f32 %v244_v40  ;;  %v103_v61 = vmul.f32 1.442695, %v89_v57  ;;  %vm76_vm5 = vcmp.gt.f32.partialorder %v704_v28, 20.0  ;;  %vm77_vm7 = vcmp.gt.f32.partialorder %v709_v36, 20.0 }
  0x14   :  { %548 = vpow2.f32 %v246_v41  ;;  %v105_v63 = vmul.f32 1.442695, %v90_v59  ;;  %vm78_vm8 = vcmp.gt.f32.partialorder %v714_v38, 20.0  ;;  %vm79_vm12 = vcmp.gt.f32.partialorder %v722_v45, 20.0 }
  0x15   :  { %550 = vpow2.f32 %v248_v43  ;;  %vm81_vm15 = vcmp.gt.f32.partialorder %v733_v51, 20.0  ;;  %vm82_vm13 = vcmp.gt.f32.partialorder %v739_v54, 20.0 }
  0x16   :  { %552 = vpow2.f32 %v250_v46 }
  0x17   :  { %554 = vpow2.f32 %v91_v49 }
  0x18   :  { %556 = vpow2.f32 %v93_v50 }
  0x19   :  { %558 = vpow2.f32 %v95_v53 }
  0x1a   :  { %560 = vpow2.f32 %v97_v56 }
  0x1b   :  { %562 = vpow2.f32 %v99_v58 }
  0x1c   :  { %v744_v62 = vpop.eup %538  ;;  %564 = vpow2.f32 %v101_v60 }
  0x1d   :  { %v746_v0 = vpop.eup %540  ;;  %v252_v1 = vsel %vm187_vm0, %v744_v62, 0.0  ;;  %566 = vpow2.f32 %v103_v61 }
  0x1e   :  { %v750_v2 = vpop.eup %542  ;;  %v253_v3 = vsel %vm187_vm0, %v746_v0, 0.0  ;;  %568 = vpow2.f32 %v105_v63 }
  0x1f   :  { %v754_v4 = vpop.eup %544  ;;  %v254_v5 = vadd.f32 %v253_v3, %v252_v1  ;;  %v255_v6 = vsel %vm187_vm0, %v750_v2, 0.0 }
  0x20   :  { %v758_v7 = vpop.eup %546  ;;  %v257_v8 = vsel %vm187_vm0, %v754_v4, 0.0 }
  0x21   :  { %v762_v9 = vpop.eup %548  ;;  %v256_v10 = vadd.f32 %v255_v6, %v254_v5  ;;  %v259_v11 = vsel %vm187_vm0, %v758_v7, 0.0 }
  0x22   :  { %v766_v12 = vpop.eup %550  ;;  %v260_v13 = vsel %vm187_vm0, %v762_v9, 0.0 }
  0x23   :  { %v770_v14 = vpop.eup %552  ;;  %v258_v15 = vadd.f32 %v257_v8, %v256_v10  ;;  %v261_v16 = vadd.f32 %v260_v13, %v259_v11  ;;  %v262_v17 = vsel %vm187_vm0, %v766_v12, 0.0 }
  0x24   :  { %v555_v18 = vpop.eup %554  ;;  %v264_v19 = vsel %vm187_vm0, %v770_v14, 0.0 }
  0x25   :  { %v557_v20 = vpop.eup %556  ;;  %570 = vrcp.f32 %v258_v15  ;;  %v263_v21 = vadd.f32 %v262_v17, %v261_v16  ;;  %v107_v22 = vadd.f32 1.0, %v555_v18  ;;  %v110_v23 = vmul.f32 -0.5, %v555_v18 }
  0x26   :  { %v559_v24 = vpop.eup %558  ;;  %v116_v25 = vadd.f32 1.0, %v557_v20  ;;  %v119_v26 = vmul.f32 -0.5, %v557_v20  ;;  %v113_v33 = vand.u32 2147483647, %v555_v18  ;;  %v122_v35 = vand.u32 2147483647, %v557_v20 }
  0x27   :  { %v561_v29 = vpop.eup %560  ;;  %v265_v30 = vadd.f32 %v264_v19, %v263_v21  ;;  %572 = vlog2.f32 %v107_v22  ;;  %v125_v31 = vadd.f32 1.0, %v559_v24  ;;  %v111_v34 = vadd.f32 1.0, %v110_v23 }
  0x28   :  { %v776_v32 = vpop.eup %562  ;;  %574 = vlog2.f32 %v116_v25  ;;  %v128_v37 = vmul.f32 -0.5, %v559_v24  ;;  %v120_v40 = vadd.f32 1.0, %v119_v26  ;;  %v134_v41 = vadd.f32 1.0, %v561_v29 }
  0x29   :  { %576 = vrcp.f32 %v265_v30  ;;  %v778_v39 = vpop.eup %564  ;;  %v137_v42 = vmul.f32 -0.5, %v561_v29  ;;  %v143_v43 = vadd.f32 1.0, %v776_v32  ;;  %v131_v46 = vand.u32 2147483647, %v559_v24 }
  0x2a   :  { %578 = vlog2.f32 %v125_v31  ;;  %v781_v44 = vpop.eup %566  ;;  %v146_v47 = vmul.f32 -0.5, %v776_v32  ;;  %v129_v50 = vadd.f32 1.0, %v128_v37  ;;  %v152_v53 = vadd.f32 1.0, %v778_v39 }
  0x2b   :  { %580 = vlog2.f32 %v134_v41  ;;  %v784_v49 = vpop.eup %568  ;;  %v138_v52 = vadd.f32 1.0, %v137_v42  ;;  %v787_v55 = vmul.f32 %v555_v18, %v111_v34  ;;  %vm789_vm1 = vcmp.lt.f32.partialorder %v113_v33, 0.0004427343 }
  0x2c   :  { %v793_v57 = vmul.f32 %v557_v20, %v120_v40  ;;  %vm795_vm2 = vcmp.lt.f32.partialorder %v122_v35, 0.0004427343  ;;  %v140_v59 = vand.u32 2147483647, %v561_v29  ;;  %v155_v60 = vmul.f32 -0.5, %v778_v39 }
  0x2d   :  { %582 = vlog2.f32 %v143_v43  ;;  %v149_v61 = vand.u32 2147483647, %v776_v32  ;;  %v161_v63 = vadd.f32 1.0, %v781_v44  ;;  %v164_v1 = vmul.f32 -0.5, %v781_v44 }
  0x2e   :  { %vm804_vm4 = vcmp.lt.f32.partialorder %v131_v46, 0.0004427343  ;;  %v147_v5 = vadd.f32 1.0, %v146_v47  ;;  %584 = vlog2.f32 %v152_v53  ;;  %v156_v6 = vadd.f32 1.0, %v155_v60 }
  0x2f   :  { %v170_v8 = vadd.f32 1.0, %v784_v49  ;;  %v809_v10 = vmul.f32 %v559_v24, %v129_v50  ;;  %v811_v11 = vmul.f32 %v561_v29, %v138_v52  ;;  %586 = vlog2.f32 %v161_v63 }
  0x30   :  { %v173_v13 = vmul.f32 -0.5, %v784_v49  ;;  %vm815_vm6 = vcmp.lt.f32.partialorder %v140_v59, 0.0004427343  ;;  %v158_v17 = vand.u32 2147483647, %v778_v39  ;;  %v165_v18 = vadd.f32 1.0, %v164_v1 }
  0x31   :  { %v167_v19 = vand.u32 2147483647, %v781_v44  ;;  %588 = vlog2.f32 %v170_v8  ;;  %v836_v25 = vmul.f32 %v776_v32, %v147_v5  ;;  %vm860_vm9 = vcmp.lt.f32.partialorder %v149_v61, 0.0004427343 }
  0x32   :  { %v571_v15 = vpop.eup %570  ;;  %v174_v26 = vadd.f32 1.0, %v173_v13  ;;  %v851_v35 = vmul.f32 %v781_v44, %v165_v18  ;;  %vm864_vm10 = vcmp.lt.f32.partialorder %v158_v17, 0.0004427343 }
  0x33   :  { %v822_v20 = vmul.f32 %v571_v15, %v744_v62  ;;  %v825_v21 = vmul.f32 %v571_v15, %v746_v0  ;;  %v828_v22 = vmul.f32 %v571_v15, %v750_v2  ;;  %v831_v23 = vmul.f32 %v571_v15, %v754_v4 }
  0x34   :  { %v573_v24 = vpop.eup %572  ;;  %v839_v62 = vmul.f32 %v778_v39, %v156_v6  ;;  %v176_v0 = vand.u32 2147483647, %v784_v49  ;;  %v854_v37 = vmul.f32 %v784_v49, %v174_v26  ;;  %vm868_vm11 = vcmp.lt.f32.partialorder %v167_v19, 0.0004427343 }
  0x35   :  { %v575_v29 = vpop.eup %574  ;;  %v354_v2 = vmul.f32 %v822_v20, %v822_v20  ;;  %v355_v4 = vmul.f32 %v825_v21, %v825_v21  ;;  %v356_v30 = vmul.f32 %v828_v22, %v828_v22  ;;  %v357_v31 = vmul.f32 %v831_v23, %v831_v23 }
  0x36   :  { %v577_v32 = vpop.eup %576  ;;  %v109_v33 = vmul.f32 0.6931472, %v573_v24  ;;  %v118_v34 = vmul.f32 0.6931472, %v575_v29  ;;  %vm883_vm14 = vcmp.lt.f32.partialorder %v176_v0, 0.0004427343 }
  0x37   :  { %v579_v39 = vpop.eup %578  ;;  %v358_v40 = vsel %vm187_vm0, %v354_v2, 0.0  ;;  %v359_v41 = vsel %vm187_vm0, %v355_v4, 0.0  ;;  %v361_v42 = vsel %vm187_vm0, %v356_v30, 0.0  ;;  %v363_v43 = vsel %vm187_vm0, %v357_v31, 0.0 }
  0x38   :  { %v360_v49 = vadd.f32 %v359_v41, %v358_v40  ;;  %v873_v50 = vmul.f32 %v577_v32, %v758_v7  ;;  %v876_v52 = vmul.f32 %v577_v32, %v762_v9  ;;  %v879_v53 = vmul.f32 %v577_v32, %v766_v12  ;;  %v581_v60 = vpop.eup %580 }
  0x39   :  { %v888_v61 = vmul.f32 %v577_v32, %v770_v14  ;;  %v115_v7 = vsel %vm789_vm1, %v787_v55, %v109_v33  ;;  %v124_v9 = vsel %vm795_vm2, %v793_v57, %v118_v34  ;;  %v127_v12 = vmul.f32 0.6931472, %v579_v39  ;;  %v464_v55 = vld [vmem:[%s1128_s2] sm:$0x3] }
  0x3a   :  { %v362_v63 = vadd.f32 %v361_v42, %v360_v49  ;;  %v365_v1 = vmul.f32 %v873_v50, %v822_v20  ;;  %v366_v14 = vmul.f32 %v876_v52, %v825_v21  ;;  %v367_v56 = vmul.f32 %v879_v53, %v828_v22  ;;  %v583_v8 = vpop.eup %582 }
  0x3b   :  { %v368_v57 = vmul.f32 %v888_v61, %v831_v23  ;;  %v133_v58 = vsel %vm804_vm4, %v809_v10, %v127_v12  ;;  %v136_v5 = vmul.f32 0.6931472, %v581_v60  ;;  %v179_v6 = vsel %vm75_vm3, %v699_v27, %v115_v7  ;;  %v585_v19 = vpop.eup %584 }
  0x3c   :  { %v364_v13 = vadd.f32 %v363_v43, %v362_v63  ;;  %v369_v15 = vsel %vm187_vm0, %v365_v1, 0.0  ;;  %v370_v17 = vsel %vm187_vm0, %v366_v14, 0.0  ;;  %v372_v18 = vsel %vm187_vm0, %v367_v56, 0.0  ;;  %v587_v0 = vpop.eup %586 }
  0x3d   :  { %v371_v24 = vadd.f32 %v370_v17, %v369_v15  ;;  %v374_v26 = vsel %vm187_vm0, %v368_v57, 0.0  ;;  %v142_v3 = vsel %vm815_vm6, %v811_v11, %v136_v5  ;;  %v180_v10 = vsel %vm76_vm5, %v704_v28, %v124_v9  ;;  %v519_v11 = vld [vmem:[%s1128_s2 + $0x2] sm:$0x3] }
  0x3e   :  { %v465_v29 = vadd.f32 %v464_v55, %v364_v13  ;;  %v181_v2 = vsel %vm77_vm7, %v709_v36, %v133_v58  ;;  %v182_v4 = vsel %vm78_vm8, %v714_v38, %v142_v3  ;;  %v188_v30 = vsel %vm187_vm0, %v179_v6, 0.0  ;;  %v589_v31 = vpop.eup %588  ;;  %v525_v3 = vld [vmem:[%s1128_s2 + $0x8] sm:$0x3] }
  0x3f   :  { %v373_v32 = vadd.f32 %v372_v18, %v371_v24  ;;  %v189_v16 = vsel %vm187_vm0, %v180_v10, 0.0  ;;  %v191_v33 = vsel %vm187_vm0, %v181_v2, 0.0  ;;  %v193_v34 = vsel %vm187_vm0, %v182_v4, 0.0 }
  0x40   :  { %466 = vst [vmem:[%s1128_s2] sm:$0x3] %v465_v29  ;;  %v190_v39 = vadd.f32 %v189_v16, %v188_v30  ;;  %v145_v40 = vmul.f32 0.6931472, %v583_v8  ;;  %v154_v41 = vmul.f32 0.6931472, %v585_v19  ;;  %v398_v60 = vmul.f32 %v873_v50, %v873_v50 }
  0x41   :  { %v163_v42 = vmul.f32 0.6931472, %v587_v0  ;;  %v375_v43 = vadd.f32 %v374_v26, %v373_v32  ;;  %v172_v49 = vmul.f32 0.6931472, %v589_v31  ;;  %v399_v7 = vmul.f32 %v876_v52, %v876_v52 }
  0x42   :  { %v192_v9 = vadd.f32 %v191_v33, %v190_v39  ;;  %v151_v12 = vsel %vm860_vm9, %v836_v25, %v145_v40  ;;  %v160_v63 = vsel %vm864_vm10, %v839_v62, %v154_v41  ;;  %vm1147_vm1 = vcmp.gt.f32.partialorder %v728_v48, 20.0 }
  0x43   :  { %v169_v1 = vsel %vm868_vm11, %v851_v35, %v163_v42  ;;  %v469_v14 = vadd.f32 %v519_v11, %v375_v43  ;;  %v178_v56 = vsel %vm883_vm14, %v854_v37, %v172_v49  ;;  %v183_v55 = vsel %vm79_vm12, %v722_v45, %v151_v12 }
  0x44   :  { %v184_v25 = vsel %vm1147_vm1, %v728_v48, %v160_v63  ;;  %v194_v46 = vadd.f32 %v193_v34, %v192_v9  ;;  %v185_v62 = vsel %vm81_vm15, %v733_v51, %v169_v1  ;;  %v186_v35 = vsel %vm82_vm13, %v739_v54, %v178_v56 }
  0x45   :  { %v195_v47 = vsel %vm187_vm0, %v183_v55, 0.0  ;;  %520 = vst [vmem:[%s1128_s2 + $0x2] sm:$0x3] %v469_v14  ;;  %v196_v37 = vsel %vm187_vm0, %v184_v25, 0.0  ;;  %v198_v44 = vsel %vm187_vm0, %v185_v62, 0.0  ;;  %v400_v59 = vmul.f32 %v879_v53, %v879_v53 }
  0x46   :  { %v202_v57 = vadd.f32 4.0, %v194_v46  ;;  %v197_v58 = vadd.f32 %v196_v37, %v195_v47  ;;  %v401_v5 = vmul.f32 %v888_v61, %v888_v61  ;;  %v402_v6 = vsel %vm187_vm0, %v398_v60, 0.0 }
  0x47   :  { %v200_v8 = vsel %vm187_vm0, %v186_v35, 0.0  ;;  %v403_v13 = vsel %vm187_vm0, %v399_v7, 0.0  ;;  %v405_v15 = vsel %vm187_vm0, %v400_v59, 0.0  ;;  %v276_v34 = vadd.f32 1.0, %v699_v27 }
  0x48   :  { %590 = vrcp.f32 %v202_v57  ;;  %v199_v17 = vadd.f32 %v198_v44, %v197_v58  ;;  %v404_v18 = vadd.f32 %v403_v13, %v402_v6  ;;  %v407_v19 = vsel %vm187_vm0, %v401_v5, 0.0 }
  0x49   :  { %v277_v39 = vadd.f32 1.0, %v704_v28  ;;  %v278_v40 = vadd.f32 1.0, %v709_v36  ;;  %v279_v41 = vadd.f32 1.0, %v714_v38  ;;  %v280_v9 = vadd.f32 1.0, %v722_v45 }
  0x4a   :  { %v201_v24 = vadd.f32 %v200_v8, %v199_v17  ;;  %v406_v26 = vadd.f32 %v405_v15, %v404_v18  ;;  %v281_v12 = vadd.f32 1.0, %v728_v48  ;;  %v282_v63 = vadd.f32 1.0, %v733_v51 }
  0x4b   :  { %v283_v1 = vadd.f32 1.0, %v739_v54 }
  0x4c   :  { %v203_v10 = vadd.f32 4.0, %v201_v24  ;;  %v408_v0 = vadd.f32 %v407_v19, %v406_v26 }
  0x4e   :  { %592 = vrcp.f32 %v203_v10  ;;  %v481_v29 = vadd.f32 %v525_v3, %v408_v0 }
  0x50   :  { %526 = vst [vmem:[%s1128_s2 + $0x8] sm:$0x3] %v481_v29 }
  0x55   :  { %v591_v2 = vpop.eup %590 }
  0x56   :  { %v205_v4 = vmul.f32 4.0, %v591_v2 }
  0x58   :  { %v208_v30 = vsub.f32 0.0, %v205_v4 }
  0x5a   :  { %v210_v31 = vmul.f32 1.442695, %v208_v30 }
  0x5b   :  { %v593_v32 = vpop.eup %592 }
  0x5c   :  { %594 = vpow2.f32 %v210_v31  ;;  %v207_v11 = vmul.f32 4.0, %v593_v32 }
  0x5e   :  { %v209_v16 = vsub.f32 0.0, %v207_v11 }
  0x60   :  { %v212_v33 = vmul.f32 1.442695, %v209_v16 }
  0x62   :  { %596 = vpow2.f32 %v212_v33 }
  0x69   :  { %v595_v42 = vpop.eup %594 }
  0x6a   :  { %v284_v43 = vmul.f32 %v595_v42, %v276_v34  ;;  %v285_v49 = vmul.f32 %v595_v42, %v277_v39  ;;  %v286_v60 = vmul.f32 %v595_v42, %v278_v40  ;;  %v287_v7 = vmul.f32 %v595_v42, %v279_v41 }
  0x6c   :  { %v292_v27 = vsel %vm187_vm0, %v284_v43, -inf  ;;  %v293_v28 = vsel %vm187_vm0, %v285_v49, -inf  ;;  %v294_v36 = vsel %vm187_vm0, %v286_v60, -inf  ;;  %v296_v38 = vsel %vm187_vm0, %v287_v7, -inf }
  0x6d   :  { %v295_v14 = vmax.f32 %v292_v27, %v294_v36  ;;  %v297_v56 = vmax.f32 %v293_v28, %v296_v38 }
  0x6f   :  { %v597_v55 = vpop.eup %596  ;;  %v298_v25 = vmax.f32 %v295_v14, %v297_v56 }
  0x70   :  { %v288_v46 = vmul.f32 %v597_v55, %v280_v9  ;;  %v289_v45 = vmul.f32 %v597_v55, %v281_v12  ;;  %v290_v62 = vmul.f32 %v597_v55, %v282_v63  ;;  %v291_v48 = vmul.f32 %v597_v55, %v283_v1 }
  0x71   :  { %v306_v35 = vsub.f32 %v284_v43, %v298_v25  ;;  %v307_v51 = vsub.f32 %v285_v49, %v298_v25  ;;  %v308_v47 = vsub.f32 %v286_v60, %v298_v25  ;;  %v309_v54 = vsub.f32 %v287_v7, %v298_v25 }
  0x72   :  { %v299_v37 = vsel %vm187_vm0, %v288_v46, -inf  ;;  %v300_v44 = vsel %vm187_vm0, %v289_v45, -inf  ;;  %v301_v59 = vsel %vm187_vm0, %v290_v62, -inf  ;;  %v303_v57 = vsel %vm187_vm0, %v291_v48, -inf }
  0x73   :  { %v314_v58 = vmul.f32 1.442695, %v306_v35  ;;  %v316_v5 = vmul.f32 1.442695, %v307_v51  ;;  %v318_v6 = vmul.f32 1.442695, %v308_v47  ;;  %v302_v8 = vmax.f32 %v299_v37, %v301_v59 }
  0x74   :  { %v320_v13 = vmul.f32 1.442695, %v309_v54  ;;  %v304_v15 = vmax.f32 %v300_v44, %v303_v57 }
  0x75   :  { %598 = vpow2.f32 %v314_v58 }
  0x76   :  { %600 = vpow2.f32 %v316_v5  ;;  %v305_v17 = vmax.f32 %v302_v8, %v304_v15 }
  0x77   :  { %602 = vpow2.f32 %v318_v6 }
  0x78   :  { %604 = vpow2.f32 %v320_v13  ;;  %v310_v18 = vsub.f32 %v288_v46, %v305_v17  ;;  %v311_v19 = vsub.f32 %v289_v45, %v305_v17  ;;  %v312_v24 = vsub.f32 %v290_v62, %v305_v17 }
  0x79   :  { %v313_v26 = vsub.f32 %v291_v48, %v305_v17 }
  0x7a   :  { %v322_v3 = vmul.f32 1.442695, %v310_v18  ;;  %v324_v10 = vmul.f32 1.442695, %v311_v19  ;;  %v326_v0 = vmul.f32 1.442695, %v312_v24 }
  0x7b   :  { %v328_v29 = vmul.f32 1.442695, %v313_v26 }
  0x7c   :  { %606 = vpow2.f32 %v322_v3  ;;  %v521_v3 = vld [vmem:[%s1128_s2 + $0x4] sm:$0x3] }
  0x7d   :  { %608 = vpow2.f32 %v324_v10 }
  0x7e   :  { %610 = vpow2.f32 %v326_v0 }
  0x7f   :  { %612 = vpow2.f32 %v328_v29 }
  0x82   :  { %v599_v2 = vpop.eup %598 }
  0x83   :  { %v601_v4 = vpop.eup %600  ;;  %v330_v30 = vsel %vm187_vm0, %v599_v2, 0.0 }
  0x84   :  { %v603_v31 = vpop.eup %602  ;;  %v331_v32 = vsel %vm187_vm0, %v601_v4, 0.0 }
  0x85   :  { %v605_v11 = vpop.eup %604  ;;  %v332_v16 = vadd.f32 %v331_v32, %v330_v30  ;;  %v333_v33 = vsel %vm187_vm0, %v603_v31, 0.0 }
  0x86   :  { %v335_v34 = vsel %vm187_vm0, %v605_v11, 0.0 }
  0x87   :  { %v334_v39 = vadd.f32 %v333_v33, %v332_v16 }
  0x89   :  { %v607_v40 = vpop.eup %606  ;;  %v336_v41 = vadd.f32 %v335_v34, %v334_v39 }
  0x8a   :  { %v609_v42 = vpop.eup %608  ;;  %v337_v43 = vsel %vm187_vm0, %v607_v40, 0.0 }
  0x8b   :  { %v611_v49 = vpop.eup %610  ;;  %614 = vrcp.f32 %v336_v41  ;;  %v338_v60 = vsel %vm187_vm0, %v609_v42, 0.0 }
  0x8c   :  { %v613_v7 = vpop.eup %612  ;;  %v339_v9 = vadd.f32 %v338_v60, %v337_v43  ;;  %v340_v12 = vsel %vm187_vm0, %v611_v49, 0.0 }
  0x8d   :  { %v342_v63 = vsel %vm187_vm0, %v613_v7, 0.0 }
  0x8e   :  { %v341_v1 = vadd.f32 %v340_v12, %v339_v9 }
  0x90   :  { %v343_v27 = vadd.f32 %v342_v63, %v341_v1 }
  0x92   :  { %616 = vrcp.f32 %v343_v27 }
  0x98   :  { %v615_v28 = vpop.eup %614 }
  0x99   :  { %v1014_v36 = vmul.f32 %v615_v28, %v599_v2  ;;  %v1016_v38 = vmul.f32 %v615_v28, %v601_v4  ;;  %v1018_v14 = vmul.f32 %v615_v28, %v603_v31  ;;  %v1020_v56 = vmul.f32 %v615_v28, %v605_v11  ;;  %v527_v11 = vld [vmem:[%s1128_s2 + $0xa] sm:$0x3] }
  0x9b   :  { %v376_v55 = vmul.f32 %v1014_v36, %v822_v20  ;;  %v377_v25 = vmul.f32 %v1016_v38, %v825_v21  ;;  %v378_v46 = vmul.f32 %v1018_v14, %v828_v22  ;;  %v379_v45 = vmul.f32 %v1020_v56, %v831_v23 }
  0x9c   :  { %v409_v62 = vmul.f32 %v1014_v36, %v873_v50  ;;  %v410_v48 = vmul.f32 %v1016_v38, %v876_v52  ;;  %v411_v35 = vmul.f32 %v1018_v14, %v879_v53  ;;  %v412_v51 = vmul.f32 %v1020_v56, %v888_v61 }
  0x9d   :  { %v380_v47 = vsel %vm187_vm0, %v376_v55, 0.0  ;;  %v381_v54 = vsel %vm187_vm0, %v377_v25, 0.0  ;;  %v383_v37 = vsel %vm187_vm0, %v378_v46, 0.0  ;;  %v385_v44 = vsel %vm187_vm0, %v379_v45, 0.0 }
  0x9e   :  { %v382_v59 = vadd.f32 %v381_v54, %v380_v47  ;;  %v413_v57 = vsel %vm187_vm0, %v409_v62, 0.0  ;;  %v414_v58 = vsel %vm187_vm0, %v410_v48, 0.0  ;;  %v416_v5 = vsel %vm187_vm0, %v411_v35, 0.0  ;;  %v529_v62 = vld [vmem:[%s1128_s2 + $0xc] sm:$0x3] }
  0x9f   :  { %v617_v6 = vpop.eup %616  ;;  %v415_v8 = vadd.f32 %v414_v58, %v413_v57  ;;  %v418_v13 = vsel %vm187_vm0, %v412_v51, 0.0  ;;  %v431_v15 = vmul.f32 %v1014_v36, %v1014_v36  ;;  %v432_v17 = vmul.f32 %v1016_v38, %v1016_v38 }
  0xa0   :  { %v384_v18 = vadd.f32 %v383_v37, %v382_v59  ;;  %v350_v19 = vmul.f32 %v617_v6, %v607_v40  ;;  %v351_v24 = vmul.f32 %v617_v6, %v609_v42  ;;  %v352_v26 = vmul.f32 %v617_v6, %v611_v49 }
  0xa1   :  { %v353_v10 = vmul.f32 %v617_v6, %v613_v7  ;;  %v417_v0 = vadd.f32 %v416_v5, %v415_v8  ;;  %v433_v29 = vmul.f32 %v1018_v14, %v1018_v14  ;;  %v434_v2 = vmul.f32 %v1020_v56, %v1020_v56 }
  0xa2   :  { %v386_v4 = vadd.f32 %v385_v44, %v384_v18  ;;  %v387_v30 = vmul.f32 %v350_v19, %v822_v20  ;;  %v388_v31 = vmul.f32 %v351_v24, %v825_v21  ;;  %v389_v32 = vmul.f32 %v352_v26, %v828_v22  ;;  %v531_v44 = vld [vmem:[%s1128_s2 + $0xe] sm:$0x3]  ;;  %v533_v18 = vld [vmem:[%s1128_s2 + $0x10] sm:$0x3] }
  0xa3   :  { %v390_v16 = vmul.f32 %v353_v10, %v831_v23  ;;  %v419_v33 = vadd.f32 %v418_v13, %v417_v0  ;;  %v420_v34 = vmul.f32 %v350_v19, %v873_v50  ;;  %v421_v39 = vmul.f32 %v351_v24, %v876_v52 }
  0xa4   :  { %v473_v40 = vadd.f32 %v521_v3, %v386_v4  ;;  %v391_v41 = vsel %vm187_vm0, %v387_v30, 0.0  ;;  %v392_v20 = vsel %vm187_vm0, %v388_v31, 0.0  ;;  %v394_v21 = vsel %vm187_vm0, %v389_v32, 0.0 }
  0xa5   :  { %v393_v42 = vadd.f32 %v392_v20, %v391_v41  ;;  %v396_v22 = vsel %vm187_vm0, %v390_v16, 0.0  ;;  %v485_v43 = vadd.f32 %v527_v11, %v419_v33  ;;  %v422_v49 = vmul.f32 %v352_v26, %v879_v53 }
  0xa6   :  { %522 = vst [vmem:[%s1128_s2 + $0x4] sm:$0x3] %v473_v40  ;;  %v423_v23 = vmul.f32 %v353_v10, %v888_v61  ;;  %v424_v50 = vsel %vm187_vm0, %v420_v34, 0.0  ;;  %v425_v52 = vsel %vm187_vm0, %v421_v39, 0.0  ;;  %v435_v60 = vsel %vm187_vm0, %v431_v15, 0.0 }
  0xa7   :  { %v395_v7 = vadd.f32 %v394_v21, %v393_v42  ;;  %528 = vst [vmem:[%s1128_s2 + $0xa] sm:$0x3] %v485_v43  ;;  %v426_v9 = vadd.f32 %v425_v52, %v424_v50  ;;  %v427_v53 = vsel %vm187_vm0, %v422_v49, 0.0  ;;  %v436_v12 = vsel %vm187_vm0, %v432_v17, 0.0  ;;  %v523_v61 = vld [vmem:[%s1128_s2 + $0x6] sm:$0x3] }
  0xa8   :  { %v429_v63 = vsel %vm187_vm0, %v423_v23, 0.0  ;;  %v437_v1 = vadd.f32 %v436_v12, %v435_v60  ;;  %v438_v27 = vsel %vm187_vm0, %v433_v29, 0.0  ;;  %v440_v28 = vsel %vm187_vm0, %v434_v2, 0.0  ;;  %v535_v2 = vld [vmem:[%s1128_s2 + $0x12] sm:$0x3] }
  0xa9   :  { %v397_v55 = vadd.f32 %v396_v22, %v395_v7  ;;  %v428_v25 = vadd.f32 %v427_v53, %v426_v9  ;;  %v442_v46 = vmul.f32 %v350_v19, %v1014_v36  ;;  %v443_v45 = vmul.f32 %v351_v24, %v1016_v38 }
  0xaa   :  { %v439_v48 = vadd.f32 %v438_v27, %v437_v1  ;;  %v444_v35 = vmul.f32 %v352_v26, %v1018_v14  ;;  %v445_v51 = vmul.f32 %v353_v10, %v1020_v56  ;;  %v453_v47 = vmul.f32 %v350_v19, %v350_v19 }
  0xab   :  { %v477_v54 = vadd.f32 %v523_v61, %v397_v55  ;;  %v430_v37 = vadd.f32 %v429_v63, %v428_v25  ;;  %v446_v36 = vsel %vm187_vm0, %v442_v46, 0.0  ;;  %v447_v38 = vsel %vm187_vm0, %v443_v45, 0.0 }
  0xac   :  { %v441_v59 = vadd.f32 %v440_v28, %v439_v48  ;;  %v448_v57 = vadd.f32 %v447_v38, %v446_v36  ;;  %v449_v58 = vsel %vm187_vm0, %v444_v35, 0.0  ;;  %v451_v5 = vsel %vm187_vm0, %v445_v51, 0.0 }
  0xad   :  { %524 = vst [vmem:[%s1128_s2 + $0x6] sm:$0x3] %v477_v54  ;;  %v489_v14 = vadd.f32 %v529_v62, %v430_v37  ;;  %v454_v56 = vmul.f32 %v351_v24, %v351_v24  ;;  %v455_v6 = vmul.f32 %v352_v26, %v352_v26  ;;  %v456_v8 = vmul.f32 %v353_v10, %v353_v10 }
  0xae   :  { %v493_v13 = vadd.f32 %v531_v44, %v441_v59  ;;  %v450_v15 = vadd.f32 %v449_v58, %v448_v57  ;;  %v457_v17 = vsel %vm187_vm0, %v453_v47, 0.0 }
  0xaf   :  { %530 = vst [vmem:[%s1128_s2 + $0xc] sm:$0x3] %v489_v14  ;;  %v458_v19 = vsel %vm187_vm0, %v454_v56, 0.0  ;;  %v460_v3 = vsel %vm187_vm0, %v455_v6, 0.0  ;;  %v462_v10 = vsel %vm187_vm0, %v456_v8, 0.0 }
  0xb0   :  { %532 = vst [vmem:[%s1128_s2 + $0xe] sm:$0x3] %v493_v13  ;;  %v452_v24 = vadd.f32 %v451_v5, %v450_v15  ;;  %v459_v26 = vadd.f32 %v458_v19, %v457_v17 }
  0xb2   :  { %v497_v0 = vadd.f32 %v533_v18, %v452_v24  ;;  %v461_v29 = vadd.f32 %v460_v3, %v459_v26 }
  0xb4   :  { %534 = vst [vmem:[%s1128_s2 + $0x10] sm:$0x3] %v497_v0  ;;  %v463_v4 = vadd.f32 %v462_v10, %v461_v29 }
  0xb6   :  { %v501_v30 = vadd.f32 %v535_v2, %v463_v4 }
  0xb8   :  { %536 = vst [vmem:[%s1128_s2 + $0x12] sm:$0x3] %v501_v30 }

</bundles_post_ra>
